<compile_context>
chip_gen: v5e
topology: v5e:2x2
jax: 0.10.0
libtpu: 0.0.40
codegen_flags: <defaults>
</compile_context>

<pallas_src>
import functools

import jax
import jax.numpy as jnp
from jax.experimental import pallas as pl
from jax.experimental.pallas import tpu as pltpu


def _round_up(x, m):
    return (x + m - 1) // m * m


# ----------------------------------------------------------------------------
# In-kernel math (shared by both reductions).
# ----------------------------------------------------------------------------
def _focal_values(logits_ct, tgt, *, gamma, alpha):
    """Per-row focal loss.  logits_ct: (C, tm) f32 rows-on-lanes; tgt: (1, tm) i32."""
    m = jnp.max(logits_ct, axis=0, keepdims=True)                       # (1, tm)
    e = jnp.exp(logits_ct - m)                                          # (C, tm)
    lse = m + jnp.log(jnp.sum(e, axis=0, keepdims=True))                # (1, tm)
    cls = jax.lax.broadcasted_iota(jnp.int32, logits_ct.shape, 0)       # (C, tm)
    tgt_logit = jnp.sum(jnp.where(cls == tgt, logits_ct, 0.0),
                        axis=0, keepdims=True)                          # (1, tm)
    ce = lse - tgt_logit                                                # (1, tm)
    pt = jnp.exp(-ce)
    one_minus_pt = jnp.maximum(1.0 - pt, 0.0)                           # guard fp negatives
    if gamma == 0.0:
        w = jnp.ones_like(one_minus_pt)
    elif gamma == 0.5:
        w = jnp.sqrt(one_minus_pt)                                      # single EUP op
    elif gamma == 1.0:
        w = one_minus_pt
    elif gamma == 2.0:
        w = one_minus_pt * one_minus_pt
    else:
        w = jnp.power(one_minus_pt, gamma)                              # generic fallback
    return alpha * w * ce                                               # (1, tm)


def _load_rows_on_lanes(logits_ref, transpose_in_kernel):
    x = logits_ref[...].astype(jnp.float32)
    if transpose_in_kernel:
        # (tm, C) -> (C, tm): classes on sublanes, rows on the 128-lane axis.
        # Runs on the XLU, which is otherwise idle in this kernel.
        x = jnp.transpose(x, (1, 0))
    return x


def _focal_rows_kernel(logits_ref, targets_ref, out_ref, *,
                       gamma, alpha, transpose_in_kernel):
    # reduction='none': per-row output.  Out-of-range lanes of a partial last
    # block are simply never stored, so no masking is needed here.
    x = _load_rows_on_lanes(logits_ref, transpose_in_kernel)
    out_ref[...] = _focal_values(x, targets_ref[...], gamma=gamma, alpha=alpha)


def _focal_sum_kernel(logits_ref, targets_ref, out_ref, *,
                      gamma, alpha, n_valid, tm, transpose_in_kernel):
    # reduction='mean'/'sum': one partial sum per grid block, written at lane
    # (0, 0) of a (1, 8, 128) slab (constraint-friendly, tiny HBM traffic).
    x = _load_rows_on_lanes(logits_ref, transpose_in_kernel)
    focal = _focal_values(x, targets_ref[...], gamma=gamma, alpha=alpha)   # (1, tm)

    ri = jax.lax.broadcasted_iota(jnp.int32, (1, 8, 128), 1)
    ci = jax.lax.broadcasted_iota(jnp.int32, (1, 8, 128), 2)

    def _write(vals):
        s = jnp.sum(vals)                                                  # scalar f32
        out_ref[...] = jnp.where((ri == 0) & (ci == 0), s, 0.0)

    if n_valid % tm == 0:
        _write(focal)                 # every block is full: no masking anywhere
    else:
        i = pl.program_id(0)
        is_last = i == pl.num_programs(0) - 1

        @pl.when(jnp.logical_not(is_last))
        def _():
            _write(focal)

        @pl.when(is_last)
        def _():
            col = i * tm + jax.lax.broadcasted_iota(jnp.int32, focal.shape, 1)
            _write(jnp.where(col < n_valid, focal, 0.0))


# ----------------------------------------------------------------------------
# pallas_call plumbing.
# ----------------------------------------------------------------------------
def _focal_loss_impl(logits, targets, *, gamma, alpha, reduction, tm, grid,
                     transpose_in_kernel):
    N, C = logits.shape
    targets_2d = targets.astype(jnp.int32).reshape(1, N)   # no-op cast for int32 targets

    if transpose_in_kernel:
        lg = logits                                          # [N, C] straight from HBM
        lg_spec = pl.BlockSpec((tm, C), lambda i: (i, 0))
    else:
        # Fallback path: one extra HBM read+write, but guaranteed-lowerable kernel.
        lg = jnp.transpose(logits, (1, 0))                   # [C, N]
        lg_spec = pl.BlockSpec((C, tm), lambda i: (0, i))
    tgt_spec = pl.BlockSpec((1, tm), lambda i: (0, i))

    cparams = pltpu.CompilerParams(
        dimension_semantics=("parallel",),        # independent blocks -> v7x 2-TC sharding
        vmem_limit_bytes=32 * 1024 * 1024,        # v5e's default scoped VMEM is only 16 MiB
    )

    if reduction in ("mean", "sum"):
        kernel = functools.partial(
            _focal_sum_kernel, gamma=float(gamma), alpha=float(alpha),
            n_valid=N, tm=tm, transpose_in_kernel=transpose_in_kernel)
        partials = pl.pallas_call(
            kernel,
            out_shape=jax.ShapeDtypeStruct((grid, 8, 128), jnp.float32),
            grid_spec=pltpu.PrefetchScalarGridSpec(
                num_scalar_prefetch=0,
                grid=(grid,),
                in_specs=[lg_spec, tgt_spec],
                out_specs=pl.BlockSpec((1, 8, 128), lambda i: (i, 0, 0)),
            ),
            compiler_params=cparams,
        )(lg, targets_2d)
        total = jnp.sum(partials)
        if reduction == "mean":
            total = total / jnp.float32(N)
        return total.astype(logits.dtype)

    # reduction == 'none': lane-dense per-row output.
    kernel = functools.partial(
        _focal_rows_kernel, gamma=float(gamma), alpha=float(alpha),
        transpose_in_kernel=transpose_in_kernel)
    per_row = pl.pallas_call(
        kernel,
        out_shape=jax.ShapeDtypeStruct((1, N), jnp.float32),
        grid_spec=pltpu.PrefetchScalarGridSpec(
            num_scalar_prefetch=0,
            grid=(grid,),
            in_specs=[lg_spec, tgt_spec],
            out_specs=pl.BlockSpec((1, tm), lambda i: (0, i)),
        ),
        compiler_params=cparams,
    )(lg, targets_2d)
    return per_row[0].astype(logits.dtype)


_XPOSE_IN_KERNEL = None   # None = not probed yet; True/False once known


def focal_loss(logits, targets, *, gamma=0.5, alpha=1.0, reduction="mean", tm=16384):
    """Multi-class focal loss matching the PyTorch reference.

    logits: [N, C] f32/bf16 (C = num_class + 1), targets: [N] int.
    reduction: 'mean' | 'sum' | 'none'.
    tm: row tile (rounded to a multiple of 128, clamped to N).  16384 is a good
        default on v5e/v6e; on v7x pass 32768 to better amortize its faster HBM.
    """
    global _XPOSE_IN_KERNEL
    N, C = logits.shape

    # Row tile: multiple of 128, no larger than needed.
    tm_eff = min(_round_up(tm, 128), _round_up(N, 128))
    if N >= 8192:
        # Keep >= 2 grid steps for large N so the 'parallel' axis can use both
        # TensorCores on v7x (step overhead is still fully amortized).
        tm_eff = min(tm_eff, _round_up(pl.cdiv(N, 2), 128))
    if tm_eff >= N:
        tm_eff = N      # single block spanning the full dim (always a legal block)
    grid = pl.cdiv(N, tm_eff)

    kwargs = dict(gamma=gamma, alpha=alpha, reduction=reduction, tm=tm_eff, grid=grid)

    if _XPOSE_IN_KERNEL is not False:
        try:
            out = _focal_loss_impl(logits, targets, transpose_in_kernel=True, **kwargs)
            _XPOSE_IN_KERNEL = True
            return out
        except Exception:
            # In-kernel transpose did not lower on this toolchain/generation:
            # fall back (for the rest of the process) to the wrapper transpose.
            _XPOSE_IN_KERNEL = False
    return _focal_loss_impl(logits, targets, transpose_in_kernel=False, **kwargs)


# ----------------------------------------------------------------------------
# Pure-JAX reference (mirrors the PyTorch module).
# ----------------------------------------------------------------------------
def _focal_loss_ref(logits, targets, gamma=0.5, alpha=1.0, reduction="mean"):
    logp = jax.nn.log_softmax(logits.astype(jnp.float32), axis=-1)
    ce = -jnp.take_along_axis(logp, targets[:, None].astype(jnp.int32), axis=-1)[:, 0]
    pt = jnp.exp(-ce)
    focal = alpha * (1.0 - pt) ** gamma * ce
    if reduction == "mean":
        return jnp.mean(focal)
    if reduction == "sum":
        return jnp.sum(focal)
    return focal


if __name__ == "__main__":
    key = jax.random.PRNGKey(0)
    k1, k2, k3, k4 = jax.random.split(key, 4)

    B, num_anchors, num_class = 2, 128, 20
    N = B * num_anchors          # 256 anchor rows
    C = num_class + 1            # 21 classes incl. background

    logits = jax.random.normal(k1, (N, C), dtype=jnp.float32)
    targets = jax.random.randint(k2, (N,), 0, C, dtype=jnp.int32)

    # mean (default PyTorch reduction)
    out_mean = focal_loss(logits, targets, gamma=0.5, alpha=1.0, reduction="mean")
    out_mean = jax.block_until_ready(out_mean)
    ref_mean = _focal_loss_ref(logits, targets, 0.5, 1.0, "mean")
    assert jnp.allclose(out_mean, ref_mean, atol=1e-5, rtol=1e-5), (out_mean, ref_mean)

    # sum
    out_sum = focal_loss(logits, targets, gamma=0.5, alpha=1.0, reduction="sum")
    ref_sum = _focal_loss_ref(logits, targets, 0.5, 1.0, "sum")
    assert jnp.allclose(out_sum, ref_sum, atol=1e-3, rtol=1e-5), (out_sum, ref_sum)

    # none (per-row)
    out_none = focal_loss(logits, targets, gamma=0.5, alpha=1.0, reduction="none")
    ref_none = _focal_loss_ref(logits, targets, 0.5, 1.0, "none")
    assert jnp.allclose(out_none, ref_none, atol=1e-5, rtol=1e-5)

    # Ragged row count + small explicit tile: exercises the partial last block
    # and the last-block-only mask path (no wrapper padding anywhere).
    N2 = 300
    logits2 = jax.random.normal(k3, (N2, C), dtype=jnp.float32)
    targets2 = jax.random.randint(k4, (N2,), 0, C, dtype=jnp.int32)
    out2 = focal_loss(logits2, targets2, gamma=2.0, alpha=1.0, reduction="mean", tm=128)
    ref2 = _focal_loss_ref(logits2, targets2, 2.0, 1.0, "mean")
    assert jnp.allclose(out2, ref2, atol=1e-5, rtol=1e-5), (out2, ref2)

    out2n = focal_loss(logits2, targets2, gamma=2.0, alpha=1.0, reduction="none", tm=128)
    ref2n = _focal_loss_ref(logits2, targets2, 2.0, 1.0, "none")
    assert jnp.allclose(out2n, ref2n, atol=1e-5, rtol=1e-5)

    print("KERNEL_OK")
</pallas_src>

<mosaic_0001>
module attributes {stable_mosaic.version = 11 : i64} {
  func.func @_focal_sum_kernel(%arg0: i32, %arg1: memref<256x21xf32, #tpu.memory_space<vmem>>, %arg2: memref<1x256xi32, #tpu.memory_space<vmem>>, %arg3: memref<1x8x128xf32, #tpu.memory_space<vmem>>) attributes {dimension_semantics = [#tpu.dimension_semantics<parallel>], iteration_bounds = array<i64: 1>, scalar_prefetch = 0 : i64, scratch_operands = 0 : i64, tpu.core_type = #tpu.core_type<tc>, window_params = [{transform_indices = @transform_0, window_bounds = array<i64: 256, 21>}, {transform_indices = @transform_1, window_bounds = array<i64: 1, 256>}, {transform_indices = @transform_2, window_bounds = array<i64: 1, 8, 128>}]} {
    %c0 = arith.constant 0 : index
    %c0_0 = arith.constant 0 : index
    %0 = vector.load %arg1[%c0, %c0_0] : memref<256x21xf32, #tpu.memory_space<vmem>>, vector<256x21xf32>
    %1 = tpu.transpose %0, [1, 0] : vector<256x21xf32> -> vector<21x256xf32>
    %c0_1 = arith.constant 0 : index
    %c0_2 = arith.constant 0 : index
    %2 = vector.load %arg2[%c0_1, %c0_2] : memref<1x256xi32, #tpu.memory_space<vmem>>, vector<1x256xi32>
    %cst = arith.constant dense<0xFF800000> : vector<256xf32>
    %3 = vector.multi_reduction <maximumf>, %1, %cst [0] : vector<21x256xf32> to vector<256xf32>
    %4 = vector.shape_cast %3 : vector<256xf32> to vector<1x256xf32>
    %5 = vector.broadcast %4 : vector<1x256xf32> to vector<21x256xf32>
    %6 = arith.subf %1, %5 : vector<21x256xf32>
    %7 = math.exp %6 : vector<21x256xf32>
    %cst_3 = arith.constant dense<0.000000e+00> : vector<256xf32>
    %8 = vector.multi_reduction <add>, %7, %cst_3 [0] : vector<21x256xf32> to vector<256xf32>
    %9 = vector.shape_cast %8 : vector<256xf32> to vector<1x256xf32>
    %10 = math.log %9 : vector<1x256xf32>
    %11 = arith.addf %4, %10 : vector<1x256xf32>
    %12 = tpu.iota {dimensions = array<i32: 0>} : vector<21x256xi32>
    %13 = vector.broadcast %2 : vector<1x256xi32> to vector<21x256xi32>
    %14 = arith.cmpi eq, %12, %13 : vector<21x256xi32>
    %cst_4 = arith.constant 0.000000e+00 : f32
    %15 = vector.broadcast %cst_4 : f32 to vector<21x256xf32>
    %16 = arith.select %14, %1, %15 : vector<21x256xi1>, vector<21x256xf32>
    %cst_5 = arith.constant dense<0.000000e+00> : vector<256xf32>
    %17 = vector.multi_reduction <add>, %16, %cst_5 [0] : vector<21x256xf32> to vector<256xf32>
    %18 = vector.shape_cast %17 : vector<256xf32> to vector<1x256xf32>
    %19 = arith.subf %11, %18 : vector<1x256xf32>
    %cst_6 = arith.constant 0.000000e+00 : f32
    %20 = vector.broadcast %cst_6 : f32 to vector<1x256xf32>
    %21 = arith.subf %20, %19 : vector<1x256xf32>
    %22 = math.exp %21 : vector<1x256xf32>
    %cst_7 = arith.constant 1.000000e+00 : f32
    %23 = vector.broadcast %cst_7 : f32 to vector<1x256xf32>
    %24 = arith.subf %23, %22 : vector<1x256xf32>
    %cst_8 = arith.constant 0.000000e+00 : f32
    %25 = vector.broadcast %cst_8 : f32 to vector<1x256xf32>
    %26 = arith.maximumf %24, %25 : vector<1x256xf32>
    %27 = math.sqrt %26 : vector<1x256xf32>
    %cst_9 = arith.constant 1.000000e+00 : f32
    %28 = vector.broadcast %cst_9 : f32 to vector<1x256xf32>
    %29 = arith.mulf %28, %27 : vector<1x256xf32>
    %30 = arith.mulf %29, %19 : vector<1x256xf32>
    %31 = tpu.iota {dimensions = array<i32: 1>} : vector<1x8x128xi32>
    %32 = tpu.iota {dimensions = array<i32: 2>} : vector<1x8x128xi32>
    %33 = vector.shape_cast %30 : vector<1x256xf32> to vector<1x1x256xf32>
    %cst_10 = arith.constant dense<0.000000e+00> : vector<1xf32>
    %34 = vector.multi_reduction <add>, %33, %cst_10 [1, 2] : vector<1x1x256xf32> to vector<1xf32>
    %35 = vector.shape_cast %34 : vector<1xf32> to vector<1x1x1xf32>
    %36 = vector.extract %35[0, 0, 0] : f32 from vector<1x1x1xf32>
    %c0_i32 = arith.constant 0 : i32
    %37 = vector.broadcast %c0_i32 : i32 to vector<1x8x128xi32>
    %38 = arith.cmpi eq, %31, %37 : vector<1x8x128xi32>
    %c0_i32_11 = arith.constant 0 : i32
    %39 = vector.broadcast %c0_i32_11 : i32 to vector<1x8x128xi32>
    %40 = arith.cmpi eq, %32, %39 : vector<1x8x128xi32>
    %41 = arith.andi %38, %40 : vector<1x8x128xi1>
    %cst_12 = arith.constant 0.000000e+00 : f32
    %42 = vector.broadcast %36 : f32 to vector<1x8x128xf32>
    %43 = vector.broadcast %cst_12 : f32 to vector<1x8x128xf32>
    %44 = arith.select %41, %42, %43 : vector<1x8x128xi1>, vector<1x8x128xf32>
    %c0_13 = arith.constant 0 : index
    %c0_14 = arith.constant 0 : index
    %c0_15 = arith.constant 0 : index
    %45 = vector.load %arg3[%c0_13, %c0_14, %c0_15] : memref<1x8x128xf32, #tpu.memory_space<vmem>>, vector<1x8x128xf32>
    tpu.vector_store %arg3[%c0_13, %c0_14, %c0_15], %44 {strides = array<i32>} : memref<1x8x128xf32, #tpu.memory_space<vmem>>, vector<1x8x128xf32>,
    return
  }
  func.func @transform_0(%arg0: i32) -> (i32, i32) {
    %c0_i32 = arith.constant 0 : i32
    %c0_i32_0 = arith.constant 0 : i32
    return %arg0, %c0_i32 : i32, i32
  }
  func.func @transform_1(%arg0: i32) -> (i32, i32) {
    %c0_i32 = arith.constant 0 : i32
    %c0_i32_0 = arith.constant 0 : i32
    return %c0_i32, %arg0 : i32, i32
  }
  func.func @transform_2(%arg0: i32) -> (i32, i32, i32) {
    %c0_i32 = arith.constant 0 : i32
    %c0_i32_0 = arith.constant 0 : i32
    %c0_i32_1 = arith.constant 0 : i32
    return %arg0, %c0_i32, %c0_i32_0 : i32, i32, i32
  }
}

module attributes {stable_mosaic.version = 11 : i64} {
  func.func @_focal_sum_kernel(%arg0: i32, %arg1: memref<21x256xf32, #tpu.memory_space<vmem>>, %arg2: memref<1x256xi32, #tpu.memory_space<vmem>>, %arg3: memref<1x8x128xf32, #tpu.memory_space<vmem>>) attributes {dimension_semantics = [#tpu.dimension_semantics<parallel>], iteration_bounds = array<i64: 1>, scalar_prefetch = 0 : i64, scratch_operands = 0 : i64, tpu.core_type = #tpu.core_type<tc>, window_params = [{transform_indices = @transform_0, window_bounds = array<i64: 21, 256>}, {transform_indices = @transform_1, window_bounds = array<i64: 1, 256>}, {transform_indices = @transform_2, window_bounds = array<i64: 1, 8, 128>}]} {
    %c0 = arith.constant 0 : index
    %c0_0 = arith.constant 0 : index
    %0 = vector.load %arg1[%c0, %c0_0] : memref<21x256xf32, #tpu.memory_space<vmem>>, vector<21x256xf32>
    %c0_1 = arith.constant 0 : index
    %c0_2 = arith.constant 0 : index
    %1 = vector.load %arg2[%c0_1, %c0_2] : memref<1x256xi32, #tpu.memory_space<vmem>>, vector<1x256xi32>
    %cst = arith.constant dense<0xFF800000> : vector<256xf32>
    %2 = vector.multi_reduction <maximumf>, %0, %cst [0] : vector<21x256xf32> to vector<256xf32>
    %3 = vector.shape_cast %2 : vector<256xf32> to vector<1x256xf32>
    %4 = vector.broadcast %3 : vector<1x256xf32> to vector<21x256xf32>
    %5 = arith.subf %0, %4 : vector<21x256xf32>
    %6 = math.exp %5 : vector<21x256xf32>
    %cst_3 = arith.constant dense<0.000000e+00> : vector<256xf32>
    %7 = vector.multi_reduction <add>, %6, %cst_3 [0] : vector<21x256xf32> to vector<256xf32>
    %8 = vector.shape_cast %7 : vector<256xf32> to vector<1x256xf32>
    %9 = math.log %8 : vector<1x256xf32>
    %10 = arith.addf %3, %9 : vector<1x256xf32>
    %11 = tpu.iota {dimensions = array<i32: 0>} : vector<21x256xi32>
    %12 = vector.broadcast %1 : vector<1x256xi32> to vector<21x256xi32>
    %13 = arith.cmpi eq, %11, %12 : vector<21x256xi32>
    %cst_4 = arith.constant 0.000000e+00 : f32
    %14 = vector.broadcast %cst_4 : f32 to vector<21x256xf32>
    %15 = arith.select %13, %0, %14 : vector<21x256xi1>, vector<21x256xf32>
    %cst_5 = arith.constant dense<0.000000e+00> : vector<256xf32>
    %16 = vector.multi_reduction <add>, %15, %cst_5 [0] : vector<21x256xf32> to vector<256xf32>
    %17 = vector.shape_cast %16 : vector<256xf32> to vector<1x256xf32>
    %18 = arith.subf %10, %17 : vector<1x256xf32>
    %cst_6 = arith.constant 0.000000e+00 : f32
    %19 = vector.broadcast %cst_6 : f32 to vector<1x256xf32>
    %20 = arith.subf %19, %18 : vector<1x256xf32>
    %21 = math.exp %20 : vector<1x256xf32>
    %cst_7 = arith.constant 1.000000e+00 : f32
    %22 = vector.broadcast %cst_7 : f32 to vector<1x256xf32>
    %23 = arith.subf %22, %21 : vector<1x256xf32>
    %cst_8 = arith.constant 0.000000e+00 : f32
    %24 = vector.broadcast %cst_8 : f32 to vector<1x256xf32>
    %25 = arith.maximumf %23, %24 : vector<1x256xf32>
    %26 = math.sqrt %25 : vector<1x256xf32>
    %cst_9 = arith.constant 1.000000e+00 : f32
    %27 = vector.broadcast %cst_9 : f32 to vector<1x256xf32>
    %28 = arith.mulf %27, %26 : vector<1x256xf32>
    %29 = arith.mulf %28, %18 : vector<1x256xf32>
    %30 = tpu.iota {dimensions = array<i32: 1>} : vector<1x8x128xi32>
    %31 = tpu.iota {dimensions = array<i32: 2>} : vector<1x8x128xi32>
    %32 = vector.shape_cast %29 : vector<1x256xf32> to vector<1x1x256xf32>
    %cst_10 = arith.constant dense<0.000000e+00> : vector<1xf32>
    %33 = vector.multi_reduction <add>, %32, %cst_10 [1, 2] : vector<1x1x256xf32> to vector<1xf32>
    %34 = vector.shape_cast %33 : vector<1xf32> to vector<1x1x1xf32>
    %35 = vector.extract %34[0, 0, 0] : f32 from vector<1x1x1xf32>
    %c0_i32 = arith.constant 0 : i32
    %36 = vector.broadcast %c0_i32 : i32 to vector<1x8x128xi32>
    %37 = arith.cmpi eq, %30, %36 : vector<1x8x128xi32>
    %c0_i32_11 = arith.constant 0 : i32
    %38 = vector.broadcast %c0_i32_11 : i32 to vector<1x8x128xi32>
    %39 = arith.cmpi eq, %31, %38 : vector<1x8x128xi32>
    %40 = arith.andi %37, %39 : vector<1x8x128xi1>
    %cst_12 = arith.constant 0.000000e+00 : f32
    %41 = vector.broadcast %35 : f32 to vector<1x8x128xf32>
    %42 = vector.broadcast %cst_12 : f32 to vector<1x8x128xf32>
    %43 = arith.select %40, %41, %42 : vector<1x8x128xi1>, vector<1x8x128xf32>
    %c0_13 = arith.constant 0 : index
    %c0_14 = arith.constant 0 : index
    %c0_15 = arith.constant 0 : index
    %44 = vector.load %arg3[%c0_13, %c0_14, %c0_15] : memref<1x8x128xf32, #tpu.memory_space<vmem>>, vector<1x8x128xf32>
    tpu.vector_store %arg3[%c0_13, %c0_14, %c0_15], %43 {strides = array<i32>} : memref<1x8x128xf32, #tpu.memory_space<vmem>>, vector<1x8x128xf32>,
    return
  }
  func.func @transform_0(%arg0: i32) -> (i32, i32) {
    %c0_i32 = arith.constant 0 : i32
    %c0_i32_0 = arith.constant 0 : i32
    return %c0_i32, %arg0 : i32, i32
  }
  func.func @transform_1(%arg0: i32) -> (i32, i32) {
    %c0_i32 = arith.constant 0 : i32
    %c0_i32_0 = arith.constant 0 : i32
    return %c0_i32, %arg0 : i32, i32
  }
  func.func @transform_2(%arg0: i32) -> (i32, i32, i32) {
    %c0_i32 = arith.constant 0 : i32
    %c0_i32_0 = arith.constant 0 : i32
    %c0_i32_1 = arith.constant 0 : i32
    return %arg0, %c0_i32, %c0_i32_0 : i32, i32, i32
  }
}

</mosaic_0001>

<bundles_post_ra>
// kernel: tpu_custom_call.1
= control target key start
LH: loop header
LB: loop body
LE: loop exit
PB: predicated region body
PF: predicated region fallthrough
CT: control target
= control target key end

     0   :  { %s484_s0 = inlined_call_operand.vmem [shape: f32[256,21], index: 0, kind: input, shape index: {}]   ;;  %s485_s1 = inlined_call_operand.vmem [shape: s32[1,256], index: 1, kind: input, shape index: {}]   ;;  %s486_s2 = inlined_call_operand.hbm [shape: f32[1,8,128], index: 2, kind: output, shape index: {}]  }
   0x1   :  { %v28_v0 = vld [vmem:[%s484_s0 + $0x80] sm:$0xff] }
   0x2   :  { %v12_v1 = vld [vmem:[%s484_s0] sm:$0xff]  ;;  %76 = vxpose.xlu1.b32.start [1/16] (narrow) %v28_v0, 24 }
   0x3   :  { %44 = vxpose.xlu0.b32.start [1/16] (narrow) %v12_v1, 24 }
   0x4   :  { %7 = vsyncpa [#allocation3], 0  ;;  %v29_v2 = vld [vmem:[%s484_s0 + $0x88] sm:$0xff]  ;;  %v30_v4 = vld [vmem:[%s484_s0 + $0x90] sm:$0xff]  ;;  %vm109_vm0 = vcmask 1044480   ;;  %v170_v50 = vlaneseq  ;;  %vm246_vm10 = vcmask 1040384  }
   0x5   :  { %v13_v3 = vld [vmem:[%s484_s0 + $0x8] sm:$0xff]  ;;  %v14_v5 = vld [vmem:[%s484_s0 + $0x10] sm:$0xff]  ;;  %v31_v6 = vld [vmem:[%s484_s0 + $0x98] sm:$0xff]  ;;  %s272_s21 = sshll.u32 %s486_s2, 4  ;;  %s273_s21 = int_to_ptr.hbm [resolvable:$true] %s272_s21 }
   0x6   :  { %v15_v7 = vld [vmem:[%s484_s0 + $0x18] sm:$0xff]  ;;  %v32_v8 = vld [vmem:[%s484_s0 + $0xa0] sm:$0xff]  ;;  %v33_v10 = vld [vmem:[%s484_s0 + $0xa8] sm:$0xff]  ;;  %v452_v55 = vshrl.u32 %v170_v50, 7 }
   0x7   :  { %v16_v9 = vld [vmem:[%s484_s0 + $0x20] sm:$0xff]  ;;  %v17_v11 = vld [vmem:[%s484_s0 + $0x28] sm:$0xff]  ;;  %v34_v12 = vld [vmem:[%s484_s0 + $0xb0] sm:$0xff] }
   0x8   :  { %v18_v13 = vld [vmem:[%s484_s0 + $0x30] sm:$0xff]  ;;  %v35_v14 = vld [vmem:[%s484_s0 + $0xb8] sm:$0xff]  ;;  %v36_v16 = vld [vmem:[%s484_s0 + $0xc0] sm:$0xff]  ;;  %v173_v59 = vadd.s32 16, %v452_v55  ;;  %v172_v1 = vadd.s32 8, %v452_v55  ;;  %vm259_vm12 = vcmp.eq.s32.totalorder %v452_v55, 0 }
   0x9   :  { %v19_v15 = vld [vmem:[%s484_s0 + $0x38] sm:$0xff]  ;;  %v20_v17 = vld [vmem:[%s484_s0 + $0x40] sm:$0xff]  ;;  %v37_v18 = vld [vmem:[%s484_s0 + $0xc8] sm:$0xff] }
   0xa   :  { %77 = vxpose.xlu1.b32.cont [2/16] (narrow) %v29_v2, 24  ;;  %v21_v19 = vld [vmem:[%s484_s0 + $0x48] sm:$0xff]  ;;  %v38_v20 = vld [vmem:[%s484_s0 + $0xd0] sm:$0xff]  ;;  %v39_v22 = vld [vmem:[%s484_s0 + $0xd8] sm:$0xff] }
   0xb   :  { %45 = vxpose.xlu0.b32.cont [2/16] (narrow) %v13_v3, 24  ;;  %v22_v21 = vld [vmem:[%s484_s0 + $0x50] sm:$0xff]  ;;  %v23_v23 = vld [vmem:[%s484_s0 + $0x58] sm:$0xff]  ;;  %v40_v24 = vld [vmem:[%s484_s0 + $0xe0] sm:$0xff] }
   0xc   :  { %v24_v25 = vld [vmem:[%s484_s0 + $0x60] sm:$0xff]  ;;  %v41_v26 = vld [vmem:[%s484_s0 + $0xe8] sm:$0xff]  ;;  %v42_v28 = vld [vmem:[%s484_s0 + $0xf0] sm:$0xff] }
   0xd   :  { %v25_v27 = vld [vmem:[%s484_s0 + $0x68] sm:$0xff]  ;;  %v26_v29 = vld [vmem:[%s484_s0 + $0x70] sm:$0xff]  ;;  %v43_v30 = vld [vmem:[%s484_s0 + $0xf8] sm:$0xff] }
   0xe   :  { %v27_v31 = vld [vmem:[%s484_s0 + $0x78] sm:$0xff]  ;;  %v108_v56 = vld [vmem:[%s485_s1] sm:$0x3]  ;;  %s334_s1 = smov [#allocation2]  }
   0xf   :  { %v175_v0 = vperm.slane %v108_v56, 1  ;;  %s270_s18 = sshll.u32 %s334_s1, 4  ;;  %s271_s18 = int_to_ptr.vmem [resolvable:$true] %s270_s18 }
  0x11   :  { %vm181_vm1 = vcmp.eq.s32.totalorder %v173_v59, %v175_v0  ;;  %vm179_vm2 = vcmp.eq.s32.totalorder %v172_v1, %v175_v0  ;;  %vm177_vm3 = vcmp.eq.s32.totalorder %v452_v55, %v175_v0 }
  0x12   :  { %78 = vxpose.xlu1.b32.cont [3/16] (narrow) %v30_v4, 24 }
  0x13   :  { %46 = vxpose.xlu0.b32.cont [3/16] (narrow) %v14_v5, 24 }
  0x1a   :  { %79 = vxpose.xlu1.b32.cont [4/16] (narrow) %v31_v6, 24 }
  0x1b   :  { %47 = vxpose.xlu0.b32.cont [4/16] (narrow) %v15_v7, 24 }
  0x22   :  { %80 = vxpose.xlu1.b32.cont [5/16] (narrow) %v32_v8, 24 }
  0x23   :  { %48 = vxpose.xlu0.b32.cont [5/16] (narrow) %v16_v9, 24  ;;  %v174_v9 = vperm.slane %v108_v56, 0 }
  0x25   :  { %vm180_vm4 = vcmp.eq.s32.totalorder %v173_v59, %v174_v9  ;;  %vm178_vm5 = vcmp.eq.s32.totalorder %v172_v1, %v174_v9  ;;  %vm176_vm6 = vcmp.eq.s32.totalorder %v452_v55, %v174_v9 }
  0x2a   :  { %81 = vxpose.xlu1.b32.cont [6/16] (narrow) %v33_v10, 24 }
  0x2b   :  { %49 = vxpose.xlu0.b32.cont [6/16] (narrow) %v17_v11, 24 }
  0x32   :  { %82 = vxpose.xlu1.b32.cont [7/16] (narrow) %v34_v12, 24 }
  0x33   :  { %50 = vxpose.xlu0.b32.cont [7/16] (narrow) %v18_v13, 24 }
  0x3a   :  { %83 = vxpose.xlu1.b32.cont [8/16] (narrow) %v35_v14, 24 }
  0x3b   :  { %51 = vxpose.xlu0.b32.cont [8/16] (narrow) %v19_v15, 24 }
  0x42   :  { %84 = vxpose.xlu1.b32.cont [9/16] (narrow) %v36_v16, 24 }
  0x43   :  { %52 = vxpose.xlu0.b32.cont [9/16] (narrow) %v20_v17, 24 }
  0x4a   :  { %85 = vxpose.xlu1.b32.cont [10/16] (narrow) %v37_v18, 24 }
  0x4b   :  { %53 = vxpose.xlu0.b32.cont [10/16] (narrow) %v21_v19, 24 }
  0x52   :  { %86 = vxpose.xlu1.b32.cont [11/16] (narrow) %v38_v20, 24 }
  0x53   :  { %54 = vxpose.xlu0.b32.cont [11/16] (narrow) %v22_v21, 24 }
  0x5a   :  { %87 = vxpose.xlu1.b32.cont [12/16] (narrow) %v39_v22, 24 }
  0x5b   :  { %55 = vxpose.xlu0.b32.cont [12/16] (narrow) %v23_v23, 24 }
  0x62   :  { %88 = vxpose.xlu1.b32.cont [13/16] (narrow) %v40_v24, 24 }
  0x63   :  { %56 = vxpose.xlu0.b32.cont [13/16] (narrow) %v24_v25, 24 }
  0x6a   :  { %89 = vxpose.xlu1.b32.cont [14/16] (narrow) %v41_v26, 24 }
  0x6b   :  { %57 = vxpose.xlu0.b32.cont [14/16] (narrow) %v25_v27, 24 }
  0x72   :  { %90 = vxpose.xlu1.b32.cont [15/16] (narrow) %v42_v28, 24 }
  0x73   :  { %58 = vxpose.xlu0.b32.cont [15/16] (narrow) %v26_v29, 24 }
  0x7a   :  { %91 = vxpose.xlu1.b32.end [16/16] (narrow) %v43_v30, 24 }
  0x7b   :  { %59 = vxpose.xlu0.b32.end [16/16] (narrow) %v27_v31, 24 }
  0xa6   :  { %v92_v32 = vpop.trf.xlu1 }
  0xa7   :  { %v446_v33 = vpop.trf.xlu0  ;;  %v183_v14 = vsel %vm177_vm3, %v92_v32, 0.0 }
  0xa8   :  { %v182_v23 = vsel %vm176_vm6, %v446_v33, 0.0 }
  0xae   :  { %v93_v34 = vpop.trf.xlu1 }
  0xaf   :  { %v61_v35 = vpop.trf.xlu0  ;;  %v185_v12 = vsel %vm179_vm2, %v93_v34, 0.0 }
  0xb0   :  { %v197_v18 = vadd.f32 %v185_v12, %v183_v14  ;;  %v184_v19 = vsel %vm178_vm5, %v61_v35, 0.0 }
  0xb1   :  { %v188_v28 = vadd.f32 %v184_v19, %v182_v23 }
  0xb6   :  { %v94_v36 = vpop.trf.xlu1 }
  0xb7   :  { %v62_v37 = vpop.trf.xlu0  ;;  %v119_v38 = vsel %vm109_vm0, %v94_v36, -inf  ;;  %v187_v11 = vsel %vm181_vm1, %v94_v36, 0.0 }
  0xb8   :  { %v110_v39 = vsel %vm109_vm0, %v62_v37, -inf  ;;  %v120_v40 = vmax.f32 %v92_v32, %v119_v38  ;;  %v198_v15 = vsel %vm109_vm0, %v187_v11, 0.0  ;;  %v186_v16 = vsel %vm180_vm4, %v62_v37, 0.0 }
  0xb9   :  { %v111_v41 = vmax.f32 %v446_v33, %v110_v39  ;;  %v199_v25 = vadd.f32 %v198_v15, %v197_v18  ;;  %v189_v26 = vsel %vm109_vm0, %v186_v16, 0.0 }
  0xba   :  { %v121_v42 = vmax.f32 %v120_v40, %v93_v34 }
  0xbb   :  { %v112_v43 = vmax.f32 %v111_v41, %v61_v35 }
  0xbc   :  { %v122_v44 = vrot.slane %v121_v42, 4 }
  0xbd   :  { %v113_v45 = vrot.slane %v112_v43, 4 }
  0xbe   :  { %v123_v46 = vmax.f32 %v121_v42, %v122_v44 }
  0xbf   :  { %v114_v47 = vmax.f32 %v112_v43, %v113_v45 }
  0xc0   :  { %v124_v48 = vrot.slane %v123_v46, 2 }
  0xc1   :  { %v115_v49 = vrot.slane %v114_v47, 2 }
  0xc2   :  { %v125_v51 = vmax.f32 %v123_v46, %v124_v48 }
  0xc3   :  { %v116_v52 = vmax.f32 %v114_v47, %v115_v49 }
  0xc4   :  { %v126_v53 = vrot.slane %v125_v51, 1 }
  0xc5   :  { %v117_v54 = vrot.slane %v116_v52, 1 }
  0xc6   :  { %v457_v57 = vmax.f32 %v125_v51, %v126_v53 }
  0xc7   :  { %v459_v58 = vmax.f32 %v116_v52, %v117_v54 }
  0xc8   :  { %v129_v60 = vsub.f32 %v92_v32, %v457_v57  ;;  %v131_v61 = vsub.f32 %v93_v34, %v457_v57  ;;  %v133_v62 = vsub.f32 %v94_v36, %v457_v57  ;;  %v190_v36 = vadd.f32 %v189_v26, %v188_v28 }
  0xc9   :  { %v128_v63 = vsub.f32 %v446_v33, %v459_v58  ;;  %v130_v2 = vsub.f32 %v61_v35, %v459_v58  ;;  %v132_v3 = vsub.f32 %v62_v37, %v459_v58  ;;  %v200_v35 = vrot.slane %v199_v25, 4 }
  0xca   :  { %v136_v4 = vmul.f32 1.442695, %v129_v60  ;;  %v140_v5 = vmul.f32 1.442695, %v131_v61  ;;  %v144_v6 = vmul.f32 1.442695, %v133_v62 }
  0xcb   :  { %v134_v7 = vmul.f32 1.442695, %v128_v63  ;;  %v138_v8 = vmul.f32 1.442695, %v130_v2  ;;  %v142_v10 = vmul.f32 1.442695, %v132_v3  ;;  %v201_v41 = vadd.f32 %v200_v35, %v199_v25 }
  0xcc   :  { %284 = vpow2.f32 %v136_v4  ;;  %v191_v33 = vrot.slane %v190_v36, 4 }
  0xcd   :  { %286 = vpow2.f32 %v140_v5  ;;  %v202_v47 = vrot.slane %v201_v41, 2 }
  0xce   :  { %288 = vpow2.f32 %v144_v6  ;;  %v192_v45 = vadd.f32 %v191_v33, %v190_v36 }
  0xcf   :  { %290 = vpow2.f32 %v134_v7  ;;  %v203_v53 = vadd.f32 %v202_v47, %v201_v41  ;;  %v245_v47 = vand.u32 127, %v170_v50 }
  0xd0   :  { %292 = vpow2.f32 %v138_v8  ;;  %v193_v52 = vrot.slane %v192_v45, 2 }
  0xd1   :  { %294 = vpow2.f32 %v142_v10  ;;  %v204_v59 = vrot.slane %v203_v53, 1  ;;  %vm260_vm13 = vcmp.eq.s32.totalorder %v245_v47, 0 }
  0xd2   :  { %v285_v13 = vpop.eup %284  ;;  %v194_v56 = vadd.f32 %v193_v52, %v192_v45  ;;  %vm261_vm14 = vmand %vm259_vm12, %vm260_vm13 }
  0xd3   :  { %v287_v17 = vpop.eup %286  ;;  %v205_v1 = vadd.f32 %v204_v59, %v203_v53 }
  0xd4   :  { %v289_v20 = vpop.eup %288  ;;  %v155_v21 = vadd.f32 %v287_v17, %v285_v13  ;;  %v195_v62 = vrot.slane %v194_v56, 1 }
  0xd5   :  { %v291_v22 = vpop.eup %290  ;;  %v156_v24 = vsel %vm109_vm0, %v289_v20, 0.0 }
  0xd6   :  { %v293_v27 = vpop.eup %292  ;;  %v157_v29 = vadd.f32 %v156_v24, %v155_v21  ;;  %v196_v5 = vadd.f32 %v195_v62, %v194_v56 }
  0xd7   :  { %v295_v30 = vpop.eup %294  ;;  %v146_v31 = vadd.f32 %v293_v27, %v291_v22 }
  0xd8   :  { %v158_v32 = vrot.slane %v157_v29, 4  ;;  %v147_v34 = vsel %vm109_vm0, %v295_v30, 0.0 }
  0xd9   :  { %v148_v37 = vadd.f32 %v147_v34, %v146_v31 }
  0xda   :  { %v159_v38 = vadd.f32 %v158_v32, %v157_v29 }
  0xdb   :  { %v149_v39 = vrot.slane %v148_v37, 4 }
  0xdc   :  { %v160_v40 = vrot.slane %v159_v38, 2 }
  0xdd   :  { %v150_v42 = vadd.f32 %v149_v39, %v148_v37 }
  0xde   :  { %v161_v43 = vadd.f32 %v160_v40, %v159_v38 }
  0xdf   :  { %v151_v44 = vrot.slane %v150_v42, 2 }
  0xe0   :  { %v162_v46 = vrot.slane %v161_v43, 1 }
  0xe1   :  { %v152_v48 = vadd.f32 %v151_v44, %v150_v42 }
  0xe2   :  { %v163_v49 = vadd.f32 %v162_v46, %v161_v43 }
  0xe3   :  { %v153_v51 = vrot.slane %v152_v48, 1 }
  0xe4   :  { %296 = vlog2.f32 %v163_v49 }
  0xe5   :  { %v154_v54 = vadd.f32 %v153_v51, %v152_v48 }
  0xe7   :  { %298 = vlog2.f32 %v154_v54 }
  0xea   :  { %v297_v60 = vpop.eup %296 }
  0xeb   :  { %v167_v61 = vmul.f32 0.6931472, %v297_v60 }
  0xed   :  { %v299_v63 = vpop.eup %298  ;;  %v169_v0 = vadd.f32 %v167_v61, %v457_v57 }
  0xee   :  { %v165_v2 = vmul.f32 0.6931472, %v299_v63 }
  0xef   :  { %v207_v3 = vsub.f32 %v169_v0, %v205_v1 }
  0xf0   :  { %v168_v4 = vadd.f32 %v165_v2, %v459_v58 }
  0xf1   :  { %v209_v6 = vsub.f32 0.0, %v207_v3 }
  0xf2   :  { %v206_v7 = vsub.f32 %v168_v4, %v196_v5 }
  0xf3   :  { %v212_v8 = vmul.f32 1.442695, %v209_v6 }
  0xf4   :  { %v208_v9 = vsub.f32 0.0, %v206_v7 }
  0xf5   :  { %300 = vpow2.f32 %v212_v8 }
  0xf6   :  { %v210_v10 = vmul.f32 1.442695, %v208_v9 }
  0xf8   :  { %302 = vpow2.f32 %v210_v10 }
  0xfb   :  { %v301_v11 = vpop.eup %300 }
  0xfc   :  { %v215_v12 = vsub.f32 1.0, %v301_v11 }
  0xfe   :  { %v303_v13 = vpop.eup %302  ;;  %v217_v14 = vmax.f32 %v215_v12, 0.0 }
  0xff   :  { %v214_v15 = vsub.f32 1.0, %v303_v13 }
 0x100   :  { %304 = vrsqrt.f32 %v217_v14  ;;  %vm237_vm7 = vcmp.eq.f32.partialorder %v217_v14, inf  ;;  %v240_v28 = vand.u32 2147483648, %v217_v14  ;;  %vm239_vm8 = vcmp.eq.f32.partialorder %v217_v14, 0.0 }
 0x101   :  { %v216_v57 = vmax.f32 %v214_v15, 0.0 }
 0x103   :  { %306 = vrsqrt.f32 %v216_v57  ;;  %vm225_vm9 = vcmp.eq.f32.partialorder %v216_v57, inf  ;;  %v228_v32 = vand.u32 2147483648, %v216_v57  ;;  %vm227_vm11 = vcmp.eq.f32.partialorder %v216_v57, 0.0 }
 0x106   :  { %v305_v16 = vpop.eup %304 }
 0x107   :  { %v231_v17 = vmul.f32 %v305_v16, %v217_v14 }
 0x109   :  { %v307_v18 = vpop.eup %306  ;;  %v232_v58 = vmul.f32 %v305_v16, %v231_v17 }
 0x10a   :  { %v219_v19 = vmul.f32 %v307_v18, %v216_v57 }
 0x10b   :  { %v233_v20 = vmul.f32 0.5, %v232_v58 }
 0x10c   :  { %v220_v21 = vmul.f32 %v307_v18, %v219_v19 }
 0x10d   :  { %v234_v22 = vsub.f32 1.5, %v233_v20 }
 0x10e   :  { %v221_v23 = vmul.f32 0.5, %v220_v21 }
 0x10f   :  { %v235_v24 = vmul.f32 %v305_v16, %v234_v22 }
 0x110   :  { %v222_v25 = vsub.f32 1.5, %v221_v23 }
 0x111   :  { %v236_v26 = vmul.f32 %v235_v24, %v217_v14 }
 0x112   :  { %v223_v27 = vmul.f32 %v307_v18, %v222_v25 }
 0x113   :  { %v238_v29 = vsel %vm237_vm7, %v217_v14, %v236_v26 }
 0x114   :  { %v224_v30 = vmul.f32 %v223_v27, %v216_v57  ;;  %v241_v31 = vsel %vm239_vm8, %v240_v28, %v238_v29 }
 0x115   :  { %v243_v34 = vmul.f32 %v241_v31, %v207_v3 }
 0x116   :  { %v226_v36 = vsel %vm225_vm9, %v216_v57, %v224_v30 }
 0x117   :  { %v229_v35 = vsel %vm227_vm11, %v228_v32, %v226_v36  ;;  %v248_v38 = vsel %vm246_vm10, %v243_v34, 0.0 }
 0x118   :  { %v242_v37 = vmul.f32 %v229_v35, %v206_v7 }
 0x11a   :  { %v247_v39 = vsel %vm246_vm10, %v242_v37, 0.0 }
 0x11b   :  { %v249_v40 = vadd.f32 %v248_v38, %v247_v39 }
 0x11d   :  { %250 = vadd.xlane.f32.xlu2 %v249_v40 }
 0x190   :  { %v251_v33 = vpop.xlane.xlu2 %250 }
 0x191   :  { %v252_v41 = vrot.slane %v251_v33, 4 }
 0x193   :  { %v253_v42 = vadd.f32 %v252_v41, %v251_v33 }
 0x195   :  { %v254_v43 = vrot.slane %v253_v42, 2 }
 0x197   :  { %v255_v44 = vadd.f32 %v254_v43, %v253_v42 }
 0x199   :  { %v256_v45 = vrot.slane %v255_v44, 1 }
 0x19b   :  { %v257_v46 = vadd.f32 %v256_v45, %v255_v44 }
 0x19d   :  { %281 = vpush %v257_v46 }
 0x1ce   :  { %s282_s22 = spop %281 }
 0x1cf   :  { %v262_v48 = vstv %s282_s22 }
 0x1d0   :  { %v263_v49 = vsel %vm261_vm14, %v262_v48, 0.0 }
 0x1d1   :  { %264 = vst [vmem:[#allocation2] sm:$0xff] %v263_v49 }
 0x1d2   :  { %275 = dma.vmem_to_hbm [thread:$0]  %s271_s18, 128, %s273_s21, [#allocation3]  }
 0x1d3   :  { %332 = dma.done.wait [#allocation3], 128  }
 0x1d4   :  { %333 = vsyncadd [#allocation3], 4294967168 }
 0x1d5   :  { %280 = vsyncpa [#allocation3], 1 }

// kernel: tpu_custom_call.1
= control target key start
LH: loop header
LB: loop body
LE: loop exit
PB: predicated region body
PF: predicated region fallthrough
CT: control target
= control target key end

     0   :  { %7 = vsyncpa [#allocation3], 0  ;;  %s388_s0 = inlined_call_operand.hbm [shape: f32[21,256], index: 0, kind: input, shape index: {}]   ;;  %s389_s1 = inlined_call_operand.hbm [shape: s32[1,256], index: 1, kind: input, shape index: {}]   ;;  %s390_s2 = inlined_call_operand.hbm [shape: f32[1,8,128], index: 2, kind: output, shape index: {}]  }
   0x1   :  { %8 = vsyncpa [#allocation6], 0 }
   0x2   :  { %9 = vsyncpa [#allocation4], 0  ;;  %s14_s11 = sshll.u32 %s388_s0, 4  ;;  %s332_s12 = smov [#allocation2]   ;;  %s15_s11 = int_to_ptr.hbm [resolvable:$true] %s14_s11 }
   0x3   :  { %s16_s13 = sshll.u32 %s332_s12, 4  ;;  %s28_s16 = sshll.u32 %s389_s1, 4  ;;  %s17_s13 = int_to_ptr.vmem [resolvable:$true] %s16_s13  ;;  %s29_s16 = int_to_ptr.hbm [resolvable:$true] %s28_s16 }
   0x4   :  { %s333_s17 = smov 256   ;;  %s334_s18 = smov 16  }
   0x5   :  { %22 = dma.hbm_to_vmem [thread:$0]  %s15_s11, 768, %s17_s13, [#allocation3], %s333_s17, %s333_s17, %s334_s18  }
   0x6   :  { %s335_s19 = smov [#allocation5]  }
   0x7   :  { %s30_s20 = sshll.u32 %s335_s19, 4  ;;  %s31_s20 = int_to_ptr.vmem [resolvable:$true] %s30_s20 }
   0x8   :  { %33 = dma.hbm_to_vmem [thread:$0]  %s29_s16, 32, %s31_s20, [#allocation6]  }
   0x9   :  { %326 = dma.done.wait [#allocation3], 768  }
   0xa   :  { %327 = vsyncadd [#allocation3], 4294966528 }
   0xb   :  { %328 = dma.done.wait [#allocation6], 32  }
   0xc   :  { %329 = vsyncadd [#allocation6], 4294967264  ;;  %vm49_vm0 = vcmask 1044480   ;;  %v42_v0 = vld [vmem:[#allocation2] sm:$0xff]  ;;  %v43_v1 = vld [vmem:[#allocation2 + $0x8] sm:$0xff]  ;;  %v110_v16 = vlaneseq  ;;  %vm186_vm11 = vcmask 1040384  }
   0xd   :  { %v46_v2 = vld [vmem:[#allocation2 + $0x20] sm:$0x1f]  ;;  %v47_v3 = vld [vmem:[#allocation2 + $0x28] sm:$0x1f]  ;;  %v44_v4 = vld [vmem:[#allocation2 + $0x10] sm:$0xff]  ;;  %s336_s0 = smov [#allocation7]  }
   0xe   :  { %v45_v5 = vld [vmem:[#allocation2 + $0x18] sm:$0xff]  ;;  %v50_v6 = vsel %vm49_vm0, %v46_v2, -inf  ;;  %v59_v7 = vsel %vm49_vm0, %v47_v3, -inf  ;;  %v361_v21 = vshrl.u32 %v110_v16, 7  ;;  %v48_v22 = vld [vmem:[#allocation5] sm:$0x3] }
   0xf   :  { %v51_v8 = vmax.f32 %v42_v0, %v50_v6  ;;  %v60_v9 = vmax.f32 %v43_v1, %v59_v7  ;;  %v114_v29 = vperm.slane %v48_v22, 0  ;;  %v115_v30 = vperm.slane %v48_v22, 1  ;;  %s210_s1 = sshll.u32 %s336_s0, 4  ;;  %s212_s23 = sshll.u32 %s390_s2, 4  ;;  %s211_s1 = int_to_ptr.vmem [resolvable:$true] %s210_s1  ;;  %s213_s23 = int_to_ptr.hbm [resolvable:$true] %s212_s23 }
  0x10   :  { %v112_v27 = vadd.s32 8, %v361_v21  ;;  %v113_v28 = vadd.s32 16, %v361_v21  ;;  %vm199_vm12 = vcmp.eq.s32.totalorder %v361_v21, 0 }
  0x11   :  { %v52_v10 = vmax.f32 %v51_v8, %v44_v4  ;;  %v61_v11 = vmax.f32 %v60_v9, %v45_v5  ;;  %vm116_vm1 = vcmp.eq.s32.totalorder %v361_v21, %v114_v29  ;;  %vm117_vm2 = vcmp.eq.s32.totalorder %v361_v21, %v115_v30 }
  0x12   :  { %vm118_vm3 = vcmp.eq.s32.totalorder %v112_v27, %v114_v29  ;;  %vm119_vm4 = vcmp.eq.s32.totalorder %v112_v27, %v115_v30  ;;  %vm120_vm5 = vcmp.eq.s32.totalorder %v113_v28, %v114_v29  ;;  %vm121_vm6 = vcmp.eq.s32.totalorder %v113_v28, %v115_v30 }
  0x13   :  { %v53_v12 = vrot.slane %v52_v10, 4  ;;  %v62_v13 = vrot.slane %v61_v11, 4  ;;  %v122_v43 = vsel %vm116_vm1, %v42_v0, 0.0  ;;  %v124_v44 = vsel %vm118_vm3, %v44_v4, 0.0 }
  0x14   :  { %v123_v45 = vsel %vm117_vm2, %v43_v1, 0.0  ;;  %v125_v46 = vsel %vm119_vm4, %v45_v5, 0.0  ;;  %v126_v47 = vsel %vm120_vm5, %v46_v2, 0.0  ;;  %v127_v48 = vsel %vm121_vm6, %v47_v3, 0.0 }
  0x15   :  { %v54_v14 = vmax.f32 %v52_v10, %v53_v12  ;;  %v63_v15 = vmax.f32 %v61_v11, %v62_v13  ;;  %v128_v49 = vadd.f32 %v124_v44, %v122_v43  ;;  %v129_v51 = vsel %vm49_vm0, %v126_v47, 0.0 }
  0x16   :  { %v137_v52 = vadd.f32 %v125_v46, %v123_v45  ;;  %v138_v54 = vsel %vm49_vm0, %v127_v48, 0.0 }
  0x17   :  { %v55_v17 = vrot.slane %v54_v14, 2  ;;  %v64_v18 = vrot.slane %v63_v15, 2  ;;  %v130_v58 = vadd.f32 %v129_v51, %v128_v49 }
  0x18   :  { %v139_v61 = vadd.f32 %v138_v54, %v137_v52 }
  0x19   :  { %v56_v19 = vmax.f32 %v54_v14, %v55_v17  ;;  %v65_v20 = vmax.f32 %v63_v15, %v64_v18 }
  0x1b   :  { %v57_v23 = vrot.slane %v56_v19, 1  ;;  %v66_v24 = vrot.slane %v65_v20, 1 }
  0x1d   :  { %v363_v25 = vmax.f32 %v56_v19, %v57_v23  ;;  %v365_v26 = vmax.f32 %v65_v20, %v66_v24 }
  0x1f   :  { %v68_v31 = vsub.f32 %v42_v0, %v363_v25  ;;  %v69_v32 = vsub.f32 %v43_v1, %v365_v26  ;;  %v70_v33 = vsub.f32 %v44_v4, %v363_v25  ;;  %v71_v34 = vsub.f32 %v45_v5, %v365_v26 }
  0x20   :  { %v72_v35 = vsub.f32 %v46_v2, %v363_v25  ;;  %v73_v36 = vsub.f32 %v47_v3, %v365_v26  ;;  %v131_v3 = vrot.slane %v130_v58, 4  ;;  %v140_v5 = vrot.slane %v139_v61, 4 }
  0x21   :  { %v74_v37 = vmul.f32 1.442695, %v68_v31  ;;  %v76_v38 = vmul.f32 1.442695, %v69_v32  ;;  %v78_v39 = vmul.f32 1.442695, %v70_v33 }
  0x22   :  { %v80_v40 = vmul.f32 1.442695, %v71_v34  ;;  %v82_v41 = vmul.f32 1.442695, %v72_v35  ;;  %v84_v42 = vmul.f32 1.442695, %v73_v36  ;;  %v132_v9 = vadd.f32 %v131_v3, %v130_v58 }
  0x23   :  { %230 = vpow2.f32 %v74_v37  ;;  %v141_v11 = vadd.f32 %v140_v5, %v139_v61 }
  0x24   :  { %232 = vpow2.f32 %v76_v38  ;;  %v133_v15 = vrot.slane %v132_v9, 2 }
  0x25   :  { %234 = vpow2.f32 %v78_v39  ;;  %v142_v18 = vrot.slane %v141_v11, 2 }
  0x26   :  { %236 = vpow2.f32 %v80_v40  ;;  %v134_v23 = vadd.f32 %v133_v15, %v132_v9  ;;  %v185_v15 = vand.u32 127, %v110_v16 }
  0x27   :  { %238 = vpow2.f32 %v82_v41  ;;  %v143_v24 = vadd.f32 %v142_v18, %v141_v11 }
  0x28   :  { %240 = vpow2.f32 %v84_v42  ;;  %v135_v27 = vrot.slane %v134_v23, 1  ;;  %vm200_vm13 = vcmp.eq.s32.totalorder %v185_v15, 0 }
  0x29   :  { %v231_v50 = vpop.eup %230  ;;  %v144_v28 = vrot.slane %v143_v24, 1  ;;  %vm201_vm14 = vmand %vm199_vm12, %vm200_vm13 }
  0x2a   :  { %v233_v53 = vpop.eup %232  ;;  %v136_v32 = vadd.f32 %v135_v27, %v134_v23 }
  0x2b   :  { %v235_v55 = vpop.eup %234  ;;  %v145_v34 = vadd.f32 %v144_v28, %v143_v24 }
  0x2c   :  { %v237_v56 = vpop.eup %236  ;;  %v86_v57 = vadd.f32 %v235_v55, %v231_v50 }
  0x2d   :  { %v239_v59 = vpop.eup %238  ;;  %v95_v60 = vadd.f32 %v237_v56, %v233_v53 }
  0x2e   :  { %v241_v62 = vpop.eup %240  ;;  %v87_v63 = vsel %vm49_vm0, %v239_v59, 0.0 }
  0x2f   :  { %v88_v0 = vadd.f32 %v87_v63, %v86_v57  ;;  %v96_v1 = vsel %vm49_vm0, %v241_v62, 0.0 }
  0x30   :  { %v97_v2 = vadd.f32 %v96_v1, %v95_v60 }
  0x31   :  { %v89_v4 = vrot.slane %v88_v0, 4 }
  0x32   :  { %v98_v6 = vrot.slane %v97_v2, 4 }
  0x33   :  { %v90_v7 = vadd.f32 %v89_v4, %v88_v0 }
  0x34   :  { %v99_v8 = vadd.f32 %v98_v6, %v97_v2 }
  0x35   :  { %v91_v10 = vrot.slane %v90_v7, 2 }
  0x36   :  { %v100_v12 = vrot.slane %v99_v8, 2 }
  0x37   :  { %v92_v13 = vadd.f32 %v91_v10, %v90_v7 }
  0x38   :  { %v101_v14 = vadd.f32 %v100_v12, %v99_v8 }
  0x39   :  { %v93_v17 = vrot.slane %v92_v13, 1 }
  0x3a   :  { %v102_v19 = vrot.slane %v101_v14, 1 }
  0x3b   :  { %v94_v20 = vadd.f32 %v93_v17, %v92_v13 }
  0x3c   :  { %v103_v22 = vadd.f32 %v102_v19, %v101_v14 }
  0x3d   :  { %242 = vlog2.f32 %v94_v20 }
  0x3e   :  { %244 = vlog2.f32 %v103_v22 }
  0x43   :  { %v243_v29 = vpop.eup %242 }
  0x44   :  { %v245_v30 = vpop.eup %244  ;;  %v105_v31 = vmul.f32 0.6931472, %v243_v29 }
  0x45   :  { %v107_v33 = vmul.f32 0.6931472, %v245_v30 }
  0x46   :  { %v108_v35 = vadd.f32 %v105_v31, %v363_v25 }
  0x47   :  { %v109_v36 = vadd.f32 %v107_v33, %v365_v26 }
  0x48   :  { %v146_v37 = vsub.f32 %v108_v35, %v136_v32 }
  0x49   :  { %v147_v38 = vsub.f32 %v109_v36, %v145_v34 }
  0x4a   :  { %v148_v39 = vsub.f32 0.0, %v146_v37 }
  0x4b   :  { %v149_v40 = vsub.f32 0.0, %v147_v38 }
  0x4c   :  { %v150_v41 = vmul.f32 1.442695, %v148_v39 }
  0x4d   :  { %v152_v42 = vmul.f32 1.442695, %v149_v40 }
  0x4e   :  { %246 = vpow2.f32 %v150_v41 }
  0x4f   :  { %248 = vpow2.f32 %v152_v42 }
  0x54   :  { %v247_v43 = vpop.eup %246 }
  0x55   :  { %v249_v44 = vpop.eup %248  ;;  %v154_v45 = vsub.f32 1.0, %v247_v43 }
  0x56   :  { %v155_v46 = vsub.f32 1.0, %v249_v44 }
  0x57   :  { %v156_v47 = vmax.f32 %v154_v45, 0.0 }
  0x58   :  { %v157_v48 = vmax.f32 %v155_v46, 0.0 }
  0x59   :  { %250 = vrsqrt.f32 %v156_v47  ;;  %vm165_vm7 = vcmp.eq.f32.partialorder %v156_v47, inf  ;;  %v168_v58 = vand.u32 2147483648, %v156_v47  ;;  %vm167_vm8 = vcmp.eq.f32.partialorder %v156_v47, 0.0 }
  0x5a   :  { %252 = vrsqrt.f32 %v157_v48  ;;  %vm177_vm9 = vcmp.eq.f32.partialorder %v157_v48, inf  ;;  %v180_v61 = vand.u32 2147483648, %v157_v48  ;;  %vm179_vm10 = vcmp.eq.f32.partialorder %v157_v48, 0.0 }
  0x5f   :  { %v251_v49 = vpop.eup %250 }
  0x60   :  { %v253_v25 = vpop.eup %252  ;;  %v159_v50 = vmul.f32 %v251_v49, %v156_v47 }
  0x61   :  { %v171_v26 = vmul.f32 %v253_v25, %v157_v48 }
  0x62   :  { %v160_v51 = vmul.f32 %v251_v49, %v159_v50 }
  0x63   :  { %v172_v52 = vmul.f32 %v253_v25, %v171_v26 }
  0x64   :  { %v161_v53 = vmul.f32 0.5, %v160_v51 }
  0x65   :  { %v173_v54 = vmul.f32 0.5, %v172_v52 }
  0x66   :  { %v162_v55 = vsub.f32 1.5, %v161_v53 }
  0x67   :  { %v174_v56 = vsub.f32 1.5, %v173_v54 }
  0x68   :  { %v163_v57 = vmul.f32 %v251_v49, %v162_v55 }
  0x69   :  { %v175_v59 = vmul.f32 %v253_v25, %v174_v56 }
  0x6a   :  { %v164_v60 = vmul.f32 %v163_v57, %v156_v47 }
  0x6b   :  { %v176_v62 = vmul.f32 %v175_v59, %v157_v48 }
  0x6c   :  { %v166_v63 = vsel %vm165_vm7, %v156_v47, %v164_v60 }
  0x6d   :  { %v169_v0 = vsel %vm167_vm8, %v168_v58, %v166_v63  ;;  %v178_v1 = vsel %vm177_vm9, %v157_v48, %v176_v62 }
  0x6e   :  { %v181_v2 = vsel %vm179_vm10, %v180_v61, %v178_v1  ;;  %v182_v3 = vmul.f32 %v169_v0, %v146_v37 }
  0x6f   :  { %v183_v4 = vmul.f32 %v181_v2, %v147_v38 }
  0x70   :  { %v187_v5 = vsel %vm186_vm11, %v182_v3, 0.0 }
  0x71   :  { %v188_v6 = vsel %vm186_vm11, %v183_v4, 0.0 }
  0x72   :  { %v189_v7 = vadd.f32 %v188_v6, %v187_v5 }
  0x74   :  { %190 = vadd.xlane.f32.xlu0 %v189_v7 }
  0xe7   :  { %v191_v8 = vpop.xlane.xlu0 %190 }
  0xe8   :  { %v192_v9 = vrot.slane %v191_v8, 4 }
  0xea   :  { %v193_v10 = vadd.f32 %v192_v9, %v191_v8 }
  0xec   :  { %v194_v11 = vrot.slane %v193_v10, 2 }
  0xee   :  { %v195_v12 = vadd.f32 %v194_v11, %v193_v10 }
  0xf0   :  { %v196_v13 = vrot.slane %v195_v12, 1 }
  0xf2   :  { %v197_v14 = vadd.f32 %v196_v13, %v195_v12 }
  0xf4   :  { %223 = vpush %v197_v14 }
 0x125   :  { %s224_s24 = spop %223 }
 0x126   :  { %v202_v17 = vstv %s224_s24 }
 0x127   :  { %v203_v18 = vsel %vm201_vm14, %v202_v17, 0.0 }
 0x128   :  { %204 = vst [vmem:[#allocation7] sm:$0xff] %v203_v18 }
 0x129   :  { %215 = dma.vmem_to_hbm [thread:$0]  %s211_s1, 128, %s213_s23, [#allocation4]  }
 0x12a   :  { %330 = dma.done.wait [#allocation4], 128  }
 0x12b   :  { %331 = vsyncadd [#allocation4], 4294967168 }
 0x12c   :  { %220 = vsyncpa [#allocation3], 1 }
 0x12d   :  { %221 = vsyncpa [#allocation6], 1 }
 0x12e   :  { %222 = vsyncpa [#allocation4], 1 }

</bundles_post_ra>
